<compile_context>
chip_gen: v6e
topology: v6e:2x2x1
jax: 0.10.0
libtpu: 0.0.40
codegen_flags: <defaults>
</compile_context>

<pallas_src>
import math
import functools

import jax
import jax.numpy as jnp
from jax.experimental import pallas as pl
from jax.experimental.pallas import tpu as pltpu


def _pe_kernel(sx_ref, cx_ref, sy_ref, cy_ref, out_ref, *, num_pos_feats,
               split_store):
    """Compute one block of `ti` image rows via the angle-addition identity.

    sx_ref, cx_ref: (1,  w, npf)   sin/cos of per-column phase ax
    sy_ref, cy_ref: (ti, 1, npf)   sin/cos of per-row    phase ay
    out_ref:        (ti, w, 2*npf) [sin(ax+ay) | cos(ax+ay)]
    """
    sx = sx_ref[...]
    cx = cx_ref[...]
    sy = sy_ref[...]
    cy = cy_ref[...]

    # Full-size work is 4 muls + 2 adds (VPU only); broadcasts are along the
    # leading block dim (reuse) and the sublane dim (cheap sublane broadcast).
    sin_pe = sy * cx + cy * sx          # (ti, w, npf)
    cos_pe = cy * cx - sy * sx          # (ti, w, npf)

    if split_store:
        # npf is a multiple of 128 -> both halves are lane-aligned, unmasked
        # vst streams; no full-width concat intermediate is materialized.
        out_ref[:, :, 0:num_pos_feats] = sin_pe.astype(out_ref.dtype)
        out_ref[:, :, num_pos_feats:2 * num_pos_feats] = cos_pe.astype(out_ref.dtype)
    else:
        out_ref[...] = jnp.concatenate([sin_pe, cos_pe],
                                       axis=-1).astype(out_ref.dtype)


def gen_2d_image_pe(gaussian_matrix, h, w, *, rows_per_block=None,
                    out_dtype=jnp.float32):
    """gaussian_matrix: (2, num_pos_feats) float32.  Returns (h*w, 2*num_pos_feats)."""
    num_pos_feats = int(gaussian_matrix.shape[1])
    width = 2 * num_pos_feats
    out_itemsize = jnp.dtype(out_dtype).itemsize

    # --- Tiny phase tables, computed in plain JAX (O((h+w)*npf) elements). ---
    # Normalized coords match the PyTorch cumsum construction:
    # (cumsum(ones) - 0.5) / n == (arange + 0.5) / n.
    two_pi = 2.0 * math.pi
    cx = 2.0 * ((jnp.arange(w, dtype=jnp.float32) + 0.5) / w) - 1.0    # (w,)
    cy = 2.0 * ((jnp.arange(h, dtype=jnp.float32) + 0.5) / h) - 1.0    # (h,)
    ax = two_pi * cx[:, None] * gaussian_matrix[0, :][None, :]         # (w, npf)
    ay = two_pi * cy[:, None] * gaussian_matrix[1, :][None, :]         # (h, npf)
    sin_x = jnp.sin(ax).reshape(1, w, num_pos_feats)
    cos_x = jnp.cos(ax).reshape(1, w, num_pos_feats)
    sin_y = jnp.sin(ay).reshape(h, 1, num_pos_feats)
    cos_y = jnp.cos(ay).reshape(h, 1, num_pos_feats)

    # --- Block sizing: ~2 MiB output blocks, prefer >= 4 grid steps. --------
    bytes_per_image_row = w * width * out_itemsize
    if rows_per_block is None:
        target_block_bytes = 2 * 1024 * 1024
        ti = max(1, min(h, target_block_bytes // max(bytes_per_image_row, 1)))
        # >= 4 steps gives both v7x TensorCores >= 2 iterations each (DMA
        # writeback pipelines behind compute); never shrink below ~512 KiB.
        min_rows = max(1, (512 * 1024 + bytes_per_image_row - 1)
                       // max(bytes_per_image_row, 1))
        while pl.cdiv(h, ti) < 4 and ti > min_rows and ti > 1:
            ti = max(1, max(min_rows, ti // 2))
    else:
        ti = max(1, min(h, int(rows_per_block)))
    grid = (pl.cdiv(h, ti),)

    split_store = (num_pos_feats % 128 == 0)

    # --- VMEM budget: 2x double-buffered output block + f32 intermediates +
    #     double-buffered tables + headroom (explicit so v5e's 16 MiB scoped
    #     default never blocks a larger user-chosen block size). -------------
    block_out_bytes = ti * w * width * out_itemsize
    interm_bytes = ti * w * width * 4
    table_bytes = 2 * (ti + w) * num_pos_feats * 4
    vmem_limit = int(min(64 * 1024 * 1024,
                         max(16 * 1024 * 1024,
                             2 * block_out_bytes + 2 * interm_bytes
                             + 4 * table_bytes + (2 << 20))))

    cost = pl.CostEstimate(
        flops=6 * h * w * num_pos_feats,            # 4 mul + 2 add per (i,j,f)
        transcendentals=0,                          # sin/cos hoisted to tables
        bytes_accessed=h * w * width * out_itemsize
        + 2 * (h + w) * num_pos_feats * 4,
    )

    kernel = functools.partial(_pe_kernel, num_pos_feats=num_pos_feats,
                               split_store=split_store)

    out3 = pl.pallas_call(
        kernel,
        out_shape=jax.ShapeDtypeStruct((h, w, width), out_dtype),
        grid=grid,
        in_specs=[
            pl.BlockSpec((1, w, num_pos_feats), lambda b: (0, 0, 0)),   # sin_x
            pl.BlockSpec((1, w, num_pos_feats), lambda b: (0, 0, 0)),   # cos_x
            pl.BlockSpec((ti, 1, num_pos_feats), lambda b: (b, 0, 0)),  # sin_y
            pl.BlockSpec((ti, 1, num_pos_feats), lambda b: (b, 0, 0)),  # cos_y
        ],
        out_specs=pl.BlockSpec((ti, w, width), lambda b: (b, 0, 0)),
        compiler_params=pltpu.CompilerParams(
            dimension_semantics=("parallel",),
            vmem_limit_bytes=vmem_limit),
        cost_estimate=cost,
    )(sin_x, cos_x, sin_y, cos_y)

    # (h, w, width) -> (h*w, width); identical ordering to
    # pe.permute(2,0,1).flatten(1).permute(1,0) in the PyTorch module.
    return out3.reshape(h * w, width)


def _reference(gaussian_matrix, h, w):
    """Pure-JAX reference matching the PyTorch forward exactly."""
    grid = jnp.ones((h, w), jnp.float32)
    y_embed = (jnp.cumsum(grid, axis=0) - 0.5) / h
    x_embed = (jnp.cumsum(grid, axis=1) - 0.5) / w
    coords = jnp.stack([x_embed, y_embed], axis=-1)          # (h, w, 2)
    coords = 2.0 * coords - 1.0
    proj = (coords[..., 0:1] * gaussian_matrix[0, :]
            + coords[..., 1:2] * gaussian_matrix[1, :])      # (h, w, npf)
    proj = 2.0 * jnp.pi * proj
    pe = jnp.concatenate([jnp.sin(proj), jnp.cos(proj)], axis=-1)
    return pe.reshape(h * w, pe.shape[-1])


if __name__ == "__main__":
    width = 256          # module default -> num_pos_feats = 128
    scale = 1.0
    h, w = 16, 16

    key = jax.random.PRNGKey(0)
    gaussian_matrix = scale * jax.random.normal(key, (2, width // 2),
                                                dtype=jnp.float32)

    ref = _reference(gaussian_matrix, h, w)

    # Forced small block -> multi-step grid with a partial last block
    # (exercises the pipelined path and out-of-bounds-row discarding).
    out = jax.block_until_ready(
        gen_2d_image_pe(gaussian_matrix, h, w, rows_per_block=6))
    assert out.shape == (h * w, width), out.shape
    err = float(jnp.max(jnp.abs(out - ref)))
    assert jnp.allclose(out, ref, atol=2e-5, rtol=1e-5), err

    # Default auto-sized block path.
    out2 = jax.block_until_ready(gen_2d_image_pe(gaussian_matrix, h, w))
    err2 = float(jnp.max(jnp.abs(out2 - ref)))
    assert jnp.allclose(out2, ref, atol=2e-5, rtol=1e-5), err2

    print("KERNEL_OK")
</pallas_src>

<mosaic_0001>
module attributes {stable_mosaic.version = 11 : i64} {
  func.func @_pe_kernel(%arg0: i32, %arg1: memref<1x16x128xf32, #tpu.memory_space<vmem>>, %arg2: memref<1x16x128xf32, #tpu.memory_space<vmem>>, %arg3: memref<6x1x128xf32, #tpu.memory_space<vmem>>, %arg4: memref<6x1x128xf32, #tpu.memory_space<vmem>>, %arg5: memref<6x16x256xf32, #tpu.memory_space<vmem>>) attributes {dimension_semantics = [#tpu.dimension_semantics<parallel>], iteration_bounds = array<i64: 3>, scalar_prefetch = 0 : i64, scratch_operands = 0 : i64, tpu.core_type = #tpu.core_type<tc>, window_params = [{pipeline_mode = #tpu.pipeline_mode<synchronous>, transform_indices = @transform_0, window_bounds = array<i64: 1, 16, 128>}, {pipeline_mode = #tpu.pipeline_mode<synchronous>, transform_indices = @transform_1, window_bounds = array<i64: 1, 16, 128>}, {transform_indices = @transform_2, window_bounds = array<i64: 6, 1, 128>}, {transform_indices = @transform_3, window_bounds = array<i64: 6, 1, 128>}, {transform_indices = @transform_4, window_bounds = array<i64: 6, 16, 256>}]} {
    %c0 = arith.constant 0 : index
    %c0_0 = arith.constant 0 : index
    %c0_1 = arith.constant 0 : index
    %0 = vector.load %arg1[%c0, %c0_0, %c0_1] : memref<1x16x128xf32, #tpu.memory_space<vmem>>, vector<1x16x128xf32>
    %c0_2 = arith.constant 0 : index
    %c0_3 = arith.constant 0 : index
    %c0_4 = arith.constant 0 : index
    %1 = vector.load %arg2[%c0_2, %c0_3, %c0_4] : memref<1x16x128xf32, #tpu.memory_space<vmem>>, vector<1x16x128xf32>
    %c0_5 = arith.constant 0 : index
    %c0_6 = arith.constant 0 : index
    %c0_7 = arith.constant 0 : index
    %2 = vector.load %arg3[%c0_5, %c0_6, %c0_7] : memref<6x1x128xf32, #tpu.memory_space<vmem>>, vector<6x1x128xf32>
    %c0_8 = arith.constant 0 : index
    %c0_9 = arith.constant 0 : index
    %c0_10 = arith.constant 0 : index
    %3 = vector.load %arg4[%c0_8, %c0_9, %c0_10] : memref<6x1x128xf32, #tpu.memory_space<vmem>>, vector<6x1x128xf32>
    %4 = vector.broadcast %2 : vector<6x1x128xf32> to vector<6x16x128xf32>
    %5 = vector.broadcast %1 : vector<1x16x128xf32> to vector<6x16x128xf32>
    %6 = arith.mulf %4, %5 : vector<6x16x128xf32>
    %7 = vector.broadcast %3 : vector<6x1x128xf32> to vector<6x16x128xf32>
    %8 = vector.broadcast %0 : vector<1x16x128xf32> to vector<6x16x128xf32>
    %9 = arith.mulf %7, %8 : vector<6x16x128xf32>
    %10 = arith.addf %6, %9 : vector<6x16x128xf32>
    %11 = vector.broadcast %3 : vector<6x1x128xf32> to vector<6x16x128xf32>
    %12 = vector.broadcast %1 : vector<1x16x128xf32> to vector<6x16x128xf32>
    %13 = arith.mulf %11, %12 : vector<6x16x128xf32>
    %14 = vector.broadcast %2 : vector<6x1x128xf32> to vector<6x16x128xf32>
    %15 = vector.broadcast %0 : vector<1x16x128xf32> to vector<6x16x128xf32>
    %16 = arith.mulf %14, %15 : vector<6x16x128xf32>
    %17 = arith.subf %13, %16 : vector<6x16x128xf32>
    %c0_11 = arith.constant 0 : index
    %c0_12 = arith.constant 0 : index
    %c0_13 = arith.constant 0 : index
    %18 = vector.load %arg5[%c0_11, %c0_12, %c0_13] : memref<6x16x256xf32, #tpu.memory_space<vmem>>, vector<6x16x128xf32>
    tpu.vector_store %arg5[%c0_11, %c0_12, %c0_13], %10 {strides = array<i32>} : memref<6x16x256xf32, #tpu.memory_space<vmem>>, vector<6x16x128xf32>,
    %c0_14 = arith.constant 0 : index
    %c0_15 = arith.constant 0 : index
    %c128 = arith.constant 128 : index
    %19 = vector.load %arg5[%c0_14, %c0_15, %c128] : memref<6x16x256xf32, #tpu.memory_space<vmem>>, vector<6x16x128xf32>
    tpu.vector_store %arg5[%c0_14, %c0_15, %c128], %17 {strides = array<i32>} : memref<6x16x256xf32, #tpu.memory_space<vmem>>, vector<6x16x128xf32>,
    return
  }
  func.func @transform_0(%arg0: i32) -> (i32, i32, i32) {
    %c0_i32 = arith.constant 0 : i32
    %c0_i32_0 = arith.constant 0 : i32
    %c0_i32_1 = arith.constant 0 : i32
    %c0_i32_2 = arith.constant 0 : i32
    return %c0_i32, %c0_i32_0, %c0_i32_1 : i32, i32, i32
  }
  func.func @transform_1(%arg0: i32) -> (i32, i32, i32) {
    %c0_i32 = arith.constant 0 : i32
    %c0_i32_0 = arith.constant 0 : i32
    %c0_i32_1 = arith.constant 0 : i32
    %c0_i32_2 = arith.constant 0 : i32
    return %c0_i32, %c0_i32_0, %c0_i32_1 : i32, i32, i32
  }
  func.func @transform_2(%arg0: i32) -> (i32, i32, i32) {
    %c0_i32 = arith.constant 0 : i32
    %c0_i32_0 = arith.constant 0 : i32
    %c0_i32_1 = arith.constant 0 : i32
    return %arg0, %c0_i32, %c0_i32_0 : i32, i32, i32
  }
  func.func @transform_3(%arg0: i32) -> (i32, i32, i32) {
    %c0_i32 = arith.constant 0 : i32
    %c0_i32_0 = arith.constant 0 : i32
    %c0_i32_1 = arith.constant 0 : i32
    return %arg0, %c0_i32, %c0_i32_0 : i32, i32, i32
  }
  func.func @transform_4(%arg0: i32) -> (i32, i32, i32) {
    %c0_i32 = arith.constant 0 : i32
    %c0_i32_0 = arith.constant 0 : i32
    %c0_i32_1 = arith.constant 0 : i32
    return %arg0, %c0_i32, %c0_i32_0 : i32, i32, i32
  }
}

</mosaic_0001>

<bundles_post_ra>
// kernel: tpu_custom_call.1
= control target key start
LH: loop header
LB: loop body
LE: loop exit
PB: predicated region body
PF: predicated region fallthrough
CT: control target
= control target key end

     0   :  { %9 = vsyncpa [#allocation3], 0  ;;  %s1373_s0 = inlined_call_operand.hbm [shape: f32[1,16,128], index: 0, kind: input, shape index: {}]   ;;  %s1374_s1 = inlined_call_operand.hbm [shape: f32[1,16,128], index: 1, kind: input, shape index: {}]   ;;  %s1375_s2 = inlined_call_operand.hbm [shape: f32[16,1,128], index: 2, kind: input, shape index: {}]   ;;  %s1376_s3 = inlined_call_operand.hbm [shape: f32[16,1,128], index: 3, kind: input, shape index: {}]   ;;  %s1377_s4 = inlined_call_operand.hbm [shape: f32[16,16,256], index: 4, kind: output, shape index: {}]  }
   0x1   :  { %10 = vsyncpa [#allocation6], 0 }
   0x2   :  { %11 = vsyncpa [#allocation4], 0 }
   0x3   :  { %13 = vsyncpa [#allocation4 + $0x1], 0  ;;  %s962_s15 = smov 0   ;;  %s964_s16 = smov 0  }
   0x4   :  { %s966_s17 = smov 0   ;;  %s968_s18 = smov 0  }
   0x5 LB: > { %s983_s19 = sadd.s32 4294967295, %s922_s18   ;;  %s627_s20 = sadd.s32 4294967294, %s922_s18   ;;  %s922_s18 = sphi %s968_s18, %s1396_s18   ;;  %s918_s17 = sphi %s966_s17, %s1395_s17   ;;  %s914_s16 = sphi %s964_s16, %s1394_s16   ;;  %s910_s15 = sphi %s962_s15, %s1393_s15  }
   0x6   : > { %s987_s21 = sadd.s32 1, %s922_s18   ;;  %s68_s22 = sadd.s32 1, %s918_s17 }
   0x7   : > { %s65_s23 = ssub.s32 %s922_s18, %s987_s21  ;;  %p75_p0 = scmp.ne.s32.totalorder %s918_s17, %s914_s16 }
   0x8   : > { %p66_p1 = scmp.eq.s32.totalorder %s65_s23, 0  ;;  %p76_p2 = scmp.eq.s32.totalorder %s922_s18, 0 }
   0x9   : > { %p81_p3 = scmp.ne.s32.totalorder %s914_s16, %s910_s15  ;;  %p1378_p4 = scmp.eq.s32.totalorder %s983_s19, 0 }
   0xa   : > { %s999_s24 = scalar_select %p66_p1, %s918_s17, %s68_s22  }
   0xb   : > { %p1001_p5 = por %p76_p2, %p75_p0  ;;  %p1007_p6 = por %p1378_p4, %p81_p3 }
   0xc   : > { %p131_p7 = scmp.eq.s32.totalorder %s983_s19, 2  ;;  %p137_p8 = scmp.eq.s32.totalorder %s627_s20, 2 }
   0xd   : > { %s1381_s26 = scalar_select %p1007_p6, 1, 0 }
   0xe   : > { %p628_p9 = scmp.ge.s32.totalorder %s922_s18, 1  ;;  %p144_p10 = scmp.lt.s32.totalorder %s922_s18, 4 }
   0xf   : > { %p1014_p11 = por %p131_p7, %p75_p0  ;;  %p1018_p12 = por %p137_p8, %p81_p3 }
  0x10   : > { %p1022_p13 = pnand %p628_p9, %p144_p10  ;;  %s924_s30 = smov [#allocation2]  }
  0x11   : > { %s1382_s27 = scalar_select %p1014_p11, 1, 0 }
  0x12   : > { %s1383_s28 = scalar_select %p1018_p12, 1, 0 }
  0x13   : > { %p688_p1 = pneg %p1022_p13  ;;  %s156_s5 = sshll.u32 %s924_s30, 4  ;;  %s157_s5 = int_to_ptr.vmem [resolvable:$true] %s156_s5 }
  0x14   : > { %s925_s7 = smov [#allocation5]   ;;  %s757_s9 = scalar_lea.vmem %s157_s5, 256 }
  0x15   : > { %p1030_p2 = pnand %p688_p1, %p1378_p4  ;;  %s169_s8 = sshll.u32 %s925_s7, 4  ;;  %s170_s8 = int_to_ptr.vmem [resolvable:$true] %s169_s8 }
  0x16   : > { %p758_p3 = scmp.ne.s32.totalorder %s157_s5, %s757_s9  ;;  %p765_p9 = scmp.lt.s32.totalorder %s157_s5, %s157_s5 }
  0x17   : > { %p748_p0 = pneg %p1030_p2  ;;  %p766_p10 = scmp.lt.s32.totalorder %s757_s9, %s757_s9 }
  0x19   : > { %p760_p7 = pnand %p758_p3, %p748_p0  ;;  %p767_p12 = por %p766_p10, %p765_p9 }
  0x1b   : > { %p761_p8 = pneg %p760_p7 }
  0x1d   : > { %p768_p1 = pnand %p767_p12, %p761_p8 }
  0x1f   : > { %771 = shalt.err (!%p768_p1)
}
  0x20   : > { %s926_s10 = smov 128   ;;  %s927_s11 = smov 8  }
  0x21   : > { %691 = dma.hbm_to_vmem [thread:$0]  (!%p1030_p2), %s1373_s0, 256, %s157_s5, [#allocation3], %s926_s10, %s926_s10, %s927_s11  }
  0x22   : > { %s783_s14 = scalar_lea.vmem %s170_s8, 256  ;;  %p791_p11 = scmp.lt.s32.totalorder %s170_s8, %s170_s8 }
  0x23   : > { %p784_p4 = scmp.ne.s32.totalorder %s170_s8, %s783_s14  ;;  %p792_p6 = scmp.lt.s32.totalorder %s783_s14, %s783_s14 }
  0x25   : > { %p786_p3 = pnand %p784_p4, %p748_p0  ;;  %p793_p9 = por %p792_p6, %p791_p11 }
  0x27   : > { %p787_p7 = pneg %p786_p3 }
  0x29   : > { %p794_p12 = pnand %p793_p9, %p787_p7 }
  0x2b   : > { %797 = shalt.err (!%p794_p12)
}
  0x2c   : > { %694 = dma.hbm_to_vmem [thread:$0]  (!%p1030_p2), %s1374_s1, 256, %s170_s8, [#allocation6], %s926_s10, %s926_s10, %s927_s11  }
  0x2d   : > { %p631_p8 = scmp.ge.s32.totalorder %s922_s18, 3 }
  0x2f   : > { %179 = sbr.rel (%p631_p8) target bundleno = 120 (0x78), region = 24 }
  0x34   : > { %182 = sbr.rel (!%p1001_p5) target bundleno = 86 (0x56), region = 28  ;;  %s183_s23 = sand.u32 (%p1001_p5), 1, %s922_s18  }
  0x35   : > { %s185_s30 = sand.u32 (%p1001_p5), 1, %s918_s17   ;;  %s188_s7 = smul.u32 (%p1001_p5), 6, %s922_s18 }
  0x36   : > { %s673_s5 = smul.u32 (%p1001_p5), 6, %s185_s30  ;;  %s1061_s10 = scalar_lea.sflag (%p1001_p5), [#allocation3], %s183_s23 }
  0x37   : > { %s189_s9 = ssub.s32 (%p1001_p5), 16, %s188_s7 }
  0x38   : > { %p190_p4 = scmp.lt.s32.totalorder (%p1001_p5), %s189_s9, 6  ;;  %s187_s11 = scalar_lea.vmem (%p1001_p5), [#allocation7], %s673_s5 }
  0x3a   : > { %s1398_s9 = smov (!%p190_p4, %s189_s9), 6 }
  0x3b   : > { %s1058_s6 = sshll.u32 %s1398_s9, 4 }
  0x3c   : > { %s194_s8 = ssub.s32 96, %s1058_s6 }
  0x3d   : > { %195 = vsyncadd %s1061_s10, %s194_s8  ;;  %p633_p6 = scmp.ne.s32.totalorder %s1058_s6, 0  ;;  %s664_s12 = smul.u32 96, %s922_s18 }
  0x3e   : > { %s199_s13 = sshll.u32 %s187_s11, 4  ;;  %s802_s7 = scalar_lea.hbm %s1375_s2, 256  ;;  %s1071_s13 = int_to_ptr.vmem [resolvable:$true] %s199_s13 }
  0x3f   : > { %s1069_s22 = scalar_lea.hbm %s1375_s2, %s664_s12 }
  0x40   : > { %s798_s23 = scalar_lea.hbm %s1069_s22, %s1058_s6  ;;  %p803_p10 = scmp.lt.s32.totalorder %s1069_s22, %s1375_s2 }
  0x41   : > { %p799_p11 = scmp.ne.s32.totalorder %s1069_s22, %s798_s23  ;;  %p804_p1 = scmp.lt.s32.totalorder %s802_s7, %s798_s23 }
  0x43   : > { %p800_p2 = pnand %p799_p11, %p633_p6  ;;  %p805_p3 = por %p804_p1, %p803_p10 }
  0x45   : > { %p801_p0 = pneg %p800_p2 }
  0x47   : > { %p806_p7 = pnand %p805_p3, %p801_p0 }
  0x49   : > { %809 = shalt.err (!%p806_p7)
}
  0x4a   : > { %s810_s11 = scalar_lea.vmem %s1071_s13, %s1058_s6  ;;  %s928_s12 = smov [#allocation7]  }
  0x4b   : > { %p811_p9 = scmp.ne.s32.totalorder %s1071_s13, %s810_s11  ;;  %s814_s14 = sshll.u32 %s928_s12, 4  ;;  %s815_s14 = int_to_ptr.vmem [resolvable:$false] %s814_s14 }
  0x4c   : > { %s816_s20 = scalar_lea.vmem %s815_s14, 192  ;;  %p817_p4 = scmp.lt.s32.totalorder %s1071_s13, %s815_s14 }
  0x4d   : > { %p812_p12 = pnand %p811_p9, %p633_p6  ;;  %p818_p11 = scmp.lt.s32.totalorder %s816_s20, %s810_s11 }
  0x4f   : > { %p813_p8 = pneg %p812_p12  ;;  %p819_p2 = por %p818_p11, %p817_p4 }
  0x51   : > { %p820_p10 = pnand %p819_p2, %p813_p8 }
  0x53   : > { %823 = shalt.err (!%p820_p10)
}
  0x54   : > { %s929_s23 = smov 16   ;;  %s930_s30 = smov 1  }
  0x55   : > { %205 = dma.hbm_to_vmem [thread:$0]  (%p633_p6), %s1069_s22, %s1058_s6, %s1071_s13, %s1061_s10, %s929_s23, %s929_s23, %s930_s30  }
  0x56 PF: > { %208 = sbr.rel (!%p1001_p5) target bundleno = 120 (0x78), region = 32  ;;  %s209_s5 = sand.u32 (%p1001_p5), 1, %s922_s18  }
  0x57   : > { %s211_s7 = sand.u32 (%p1001_p5), 1, %s918_s17   ;;  %s214_s8 = smul.u32 (%p1001_p5), 6, %s922_s18 }
  0x58   : > { %s674_s9 = smul.u32 (%p1001_p5), 6, %s211_s7  ;;  %s1105_s20 = scalar_lea.sflag (%p1001_p5), [#allocation3], %s209_s5 }
  0x59   : > { %s215_s11 = ssub.s32 (%p1001_p5), 16, %s214_s8 }
  0x5a   : > { %p216_p0 = scmp.lt.s32.totalorder (%p1001_p5), %s215_s11, 6  ;;  %s213_s6 = scalar_lea.vmem (%p1001_p5), [#allocation8], %s674_s9 }
  0x5c   : > { %s1400_s11 = smov (!%p216_p0, %s215_s11), 6 }
  0x5d   : > { %s1102_s12 = sshll.u32 %s1400_s11, 4 }
  0x5e   : > { %s220_s14 = ssub.s32 96, %s1102_s12 }
  0x5f   : > { %221 = vsyncadd %s1105_s20, %s220_s14  ;;  %p636_p5 = scmp.ne.s32.totalorder %s1102_s12, 0  ;;  %s665_s25 = smul.u32 96, %s922_s18 }
  0x60   : > { %s225_s10 = sshll.u32 %s213_s6, 4  ;;  %s828_s9 = scalar_lea.hbm %s1376_s3, 256  ;;  %s1115_s10 = int_to_ptr.vmem [resolvable:$true] %s225_s10 }
  0x61   : > { %s1113_s23 = scalar_lea.hbm %s1376_s3, %s665_s25 }
  0x62   : > { %s824_s30 = scalar_lea.hbm %s1113_s23, %s1102_s12  ;;  %p829_p7 = scmp.lt.s32.totalorder %s1113_s23, %s1376_s3 }
  0x63   : > { %p825_p6 = scmp.ne.s32.totalorder %s1113_s23, %s824_s30  ;;  %p830_p9 = scmp.lt.s32.totalorder %s828_s9, %s824_s30 }
  0x65   : > { %p826_p1 = pnand %p825_p6, %p636_p5  ;;  %p831_p12 = por %p830_p9, %p829_p7 }
  0x67   : > { %p827_p3 = pneg %p826_p1 }
  0x69   : > { %p832_p8 = pnand %p831_p12, %p827_p3 }
  0x6b   : > { %835 = shalt.err (!%p832_p8)
}
  0x6c   : > { %s836_s14 = scalar_lea.vmem %s1115_s10, %s1102_s12  ;;  %s931_s6 = smov [#allocation8]  }
  0x6d   : > { %p837_p4 = scmp.ne.s32.totalorder %s1115_s10, %s836_s14  ;;  %s840_s25 = sshll.u32 %s931_s6, 4  ;;  %s841_s25 = int_to_ptr.vmem [resolvable:$false] %s840_s25 }
  0x6e   : > { %s842_s13 = scalar_lea.vmem %s841_s25, 192  ;;  %p843_p10 = scmp.lt.s32.totalorder %s1115_s10, %s841_s25 }
  0x6f   : > { %p838_p11 = pnand %p837_p4, %p636_p5  ;;  %p844_p0 = scmp.lt.s32.totalorder %s842_s13, %s836_s14 }
  0x71   : > { %p839_p2 = pneg %p838_p11  ;;  %p845_p6 = por %p844_p0, %p843_p10 }
  0x73   : > { %p846_p1 = pnand %p845_p6, %p839_p2 }
  0x75   : > { %849 = shalt.err (!%p846_p1)
}
  0x76   : > { %s932_s22 = smov 16   ;;  %s933_s30 = smov 1  }
  0x77   : > { %231 = dma.hbm_to_vmem [thread:$0]  (%p636_p5), %s1113_s23, %s1102_s12, %s1115_s10, %s1105_s20, %s932_s22, %s932_s22, %s933_s30  }
  0x78 PF: > { %237 = sbr.rel (%p1022_p13) target bundleno = 186 (0xba), region = 36  ;;  %p1386_p3 = scmp.eq.s32.totalorder (!%p1022_p13), %s983_s19, 0 }
  0x7d   : > { %893 = dma.done.wait (%p1386_p3), [#allocation3], 256   ;;  %p1387_p7 = pmov %p1386_p3 }
  0x7e   : > { %p1388_p9 = pmov %p1386_p3 }
  0x7f   : > { %895 = vsyncadd (%p1387_p7), [#allocation3], 4294967040 }
  0x80   : > { %897 = dma.done.wait (%p1388_p9), [#allocation6], 256   ;;  %p1389_p12 = pmov %p1386_p3 }
  0x81   : > { %s247_s12 = sand.u32 1, %s983_s19   ;;  %s1153_s20 = sand.u32 1, %s914_s16  }
  0x82   : > { %899 = vsyncadd (%p1389_p12), [#allocation6], 4294967040  ;;  %s675_s29 = smul.u32 6, %s1153_s20  ;;  %s248_s10 = scalar_lea.sflag [#allocation3], %s247_s12 }
  0x83   : > { %p1390_p13 = scmp.ne.s32.totalorder %s1381_s26, 0 }
  0x84   : > { %s1156_s23 = scalar_lea.vmem [#allocation7], %s675_s29 }
  0x85   : > { %901 = dma.done.wait (%p1390_p13), %s248_s10, 192  }
  0x86   : > { %903 = vsyncadd (%p1390_p13), %s248_s10, 4294967104  ;;  %s676_s5 = smul.u32 192, %s1153_s20  ;;  %v1163_v0 = vld [vmem:[#allocation2] sm:$0xff]  ;;  %v1165_v1 = vld [vmem:[#allocation5] sm:$0xff]  ;;  %s1170_s7 = scalar_lea.vmem [#allocation8], %s675_s29 }
  0x87   : > { %v1168_v2 = vld [vmem:[%s1156_s23] ss:$0 sm:$0xff]  ;;  %v647_v3 = vld [vmem:[%s1170_s7] ss:$0 sm:$0xff]  ;;  %v1177_v6 = vld [vmem:[#allocation5 + $0x8] sm:$0xff]  ;;  %s492_s9 = scalar_lea.sflag [#allocation4], %s1153_s20 }
  0x88   : > { %v359_v4 = vmul.f32 %v1168_v2, %v1165_v1  ;;  %v1175_v5 = vld [vmem:[#allocation2 + $0x8] sm:$0xff]  ;;  %v1181_v7 = vmul.f32 %v1168_v2, %v1163_v0  ;;  %v407_v8 = vmul.f32 %v647_v3, %v1163_v0  ;;  %v360_v9 = vmul.f32 %v1168_v2, %v1177_v6  ;;  %v642_v11 = vld [vmem:[%s1156_s23 + $0x1] ss:$0 sm:$0xff]  ;;  %v1211_v27 = vld [vmem:[%s1170_s7 + $0x4] ss:$0 sm:$0xff]  ;;  %s1221_s26 = scalar_lea.vmem [#allocation9], %s676_s5 }
  0x89   : > { %v408_v10 = vmul.f32 %v647_v3, %v1175_v5  ;;  %v648_v12 = vld [vmem:[%s1170_s7 + $0x1] ss:$0 sm:$0xff]  ;;  %v1190_v13 = vld [vmem:[%s1156_s23 + $0x2] ss:$0 sm:$0xff]  ;;  %v431_v14 = vmul.f32 %v647_v3, %v1165_v1  ;;  %v361_v15 = vmul.f32 %v642_v11, %v1165_v1  ;;  %v362_v17 = vmul.f32 %v642_v11, %v1177_v6  ;;  %v649_v19 = vld [vmem:[%s1170_s7 + $0x2] ss:$0 sm:$0xff] }
  0x8a   : > { %v409_v16 = vmul.f32 %v648_v12, %v1163_v0  ;;  %v410_v18 = vmul.f32 %v648_v12, %v1175_v5  ;;  %v1199_v20 = vld [vmem:[%s1156_s23 + $0x3] ss:$0 sm:$0xff]  ;;  %v1202_v21 = vld [vmem:[%s1170_s7 + $0x3] ss:$0 sm:$0xff]  ;;  %v419_v22 = vadd.f32 %v407_v8, %v359_v4  ;;  %v363_v24 = vmul.f32 %v1190_v13, %v1165_v1  ;;  %v1208_v26 = vld [vmem:[%s1156_s23 + $0x4] ss:$0 sm:$0xff] }
  0x8b   : > { %v420_v23 = vadd.f32 %v408_v10, %v360_v9  ;;  %v411_v25 = vmul.f32 %v649_v19, %v1163_v0  ;;  %v364_v30 = vmul.f32 %v1190_v13, %v1177_v6  ;;  %v412_v31 = vmul.f32 %v649_v19, %v1175_v5  ;;  %v1217_v32 = vld [vmem:[%s1156_s23 + $0x5] ss:$0 sm:$0xff]  ;;  %v1232_v37 = vld [vmem:[%s1170_s7 + $0x5] ss:$0 sm:$0xff]  ;;  %p1391_p5 = scmp.ne.s32.totalorder %s1382_s27, 0 }
  0x8c   : > { %v421_v28 = vadd.f32 %v409_v16, %v361_v15  ;;  %v422_v29 = vadd.f32 %v410_v18, %v362_v17  ;;  %467 = vst [vmem:[%s1221_s26] sm:$0xff] %v419_v22  ;;  %v365_v34 = vmul.f32 %v1199_v20, %v1165_v1  ;;  %v413_v35 = vmul.f32 %v1202_v21, %v1163_v0  ;;  %s499_s8 = smul.u32 (%p1391_p5), 6, %s983_s19 }
  0x8d   : > { %468 = vst [vmem:[%s1221_s26 + $0x10] sm:$0xff] %v420_v23  ;;  %v423_v33 = vadd.f32 %v411_v25, %v363_v24  ;;  %v366_v36 = vmul.f32 %v1199_v20, %v1177_v6  ;;  %v424_v38 = vadd.f32 %v412_v31, %v364_v30  ;;  %v414_v39 = vmul.f32 %v1202_v21, %v1175_v5 }
  0x8e   : > { %469 = vst [vmem:[%s1221_s26 + $0x20] sm:$0xff] %v421_v28  ;;  %470 = vst [vmem:[%s1221_s26 + $0x30] sm:$0xff] %v422_v29  ;;  %v367_v40 = vmul.f32 %v1208_v26, %v1165_v1  ;;  %v415_v41 = vmul.f32 %v1211_v27, %v1163_v0  ;;  %v425_v42 = vadd.f32 %v413_v35, %v365_v34  ;;  %s500_s11 = ssub.s32 (%p1391_p5), 16, %s499_s8 }
  0x8f   : > { %471 = vst [vmem:[%s1221_s26 + $0x40] sm:$0xff] %v423_v33  ;;  %v368_v43 = vmul.f32 %v1208_v26, %v1177_v6  ;;  %v416_v44 = vmul.f32 %v1211_v27, %v1175_v5  ;;  %v369_v45 = vmul.f32 %v1217_v32, %v1165_v1  ;;  %472 = vst [vmem:[%s1221_s26 + $0x50] sm:$0xff] %v424_v38  ;;  %p501_p8 = scmp.lt.s32.totalorder (%p1391_p5), %s500_s11, 6 }
  0x90   : > { %v426_v46 = vadd.f32 %v414_v39, %v366_v36  ;;  %v427_v47 = vadd.f32 %v415_v41, %v367_v40  ;;  %v417_v48 = vmul.f32 %v1232_v37, %v1163_v0  ;;  %v370_v49 = vmul.f32 %v1217_v32, %v1177_v6  ;;  %473 = vst [vmem:[%s1221_s26 + $0x60] sm:$0xff] %v425_v42 }
  0x91   : > { %v428_v50 = vadd.f32 %v416_v44, %v368_v43  ;;  %v418_v51 = vmul.f32 %v1232_v37, %v1175_v5  ;;  %v455_v52 = vsub.f32 %v431_v14, %v1181_v7  ;;  %v432_v53 = vmul.f32 %v647_v3, %v1177_v6 }
  0x92   : > { %474 = vst [vmem:[%s1221_s26 + $0x70] sm:$0xff] %v426_v46  ;;  %475 = vst [vmem:[%s1221_s26 + $0x80] sm:$0xff] %v427_v47  ;;  %v429_v54 = vadd.f32 %v417_v48, %v369_v45  ;;  %v444_v55 = vmul.f32 %v1168_v2, %v1175_v5  ;;  %v433_v56 = vmul.f32 %v648_v12, %v1165_v1 }
  0x93   : > { %v445_v57 = vmul.f32 %v642_v11, %v1163_v0  ;;  %476 = vst [vmem:[%s1221_s26 + $0x90] sm:$0xff] %v428_v50  ;;  %v430_v58 = vadd.f32 %v418_v51, %v370_v49  ;;  %479 = vst [vmem:[%s1221_s26 + $0x8] sm:$0xff] %v455_v52  ;;  %v434_v59 = vmul.f32 %v648_v12, %v1177_v6 }
  0x94   : > { %v446_v60 = vmul.f32 %v642_v11, %v1175_v5  ;;  %v435_v61 = vmul.f32 %v649_v19, %v1165_v1  ;;  %477 = vst [vmem:[%s1221_s26 + $0xa0] sm:$0xff] %v429_v54  ;;  %v456_v62 = vsub.f32 %v432_v53, %v444_v55  ;;  %v447_v2 = vmul.f32 %v1190_v13, %v1163_v0 }
  0x95   : > { %v457_v63 = vsub.f32 %v433_v56, %v445_v57  ;;  %v436_v3 = vmul.f32 %v649_v19, %v1177_v6  ;;  %478 = vst [vmem:[%s1221_s26 + $0xb0] sm:$0xff] %v430_v58  ;;  %v448_v7 = vmul.f32 %v1190_v13, %v1175_v5  ;;  %v437_v8 = vmul.f32 %v1202_v21, %v1165_v1 }
  0x96   : > { %v458_v4 = vsub.f32 %v434_v59, %v446_v60  ;;  %v449_v9 = vmul.f32 %v1199_v20, %v1163_v0  ;;  %480 = vst [vmem:[%s1221_s26 + $0x18] sm:$0xff] %v456_v62  ;;  %v459_v10 = vsub.f32 %v435_v61, %v447_v2  ;;  %v438_v11 = vmul.f32 %v1202_v21, %v1177_v6 }
  0x97   : > { %481 = vst [vmem:[%s1221_s26 + $0x28] sm:$0xff] %v457_v63  ;;  %v450_v12 = vmul.f32 %v1199_v20, %v1175_v5  ;;  %v439_v13 = vmul.f32 %v1211_v27, %v1165_v1  ;;  %v460_v14 = vsub.f32 %v436_v3, %v448_v7  ;;  %v451_v16 = vmul.f32 %v1208_v26, %v1163_v0 }
  0x98   : > { %482 = vst [vmem:[%s1221_s26 + $0x38] sm:$0xff] %v458_v4  ;;  %v461_v15 = vsub.f32 %v437_v8, %v449_v9  ;;  %v440_v17 = vmul.f32 %v1211_v27, %v1177_v6  ;;  %483 = vst [vmem:[%s1221_s26 + $0x48] sm:$0xff] %v459_v10  ;;  %v452_v19 = vmul.f32 %v1208_v26, %v1175_v5 }
  0x99   : > { %v462_v18 = vsub.f32 %v438_v11, %v450_v12  ;;  %v441_v20 = vmul.f32 %v1232_v37, %v1165_v1  ;;  %v453_v21 = vmul.f32 %v1217_v32, %v1163_v0  ;;  %484 = vst [vmem:[%s1221_s26 + $0x58] sm:$0xff] %v460_v14  ;;  %v463_v22 = vsub.f32 %v439_v13, %v451_v16 }
  0x9a   : > { %485 = vst [vmem:[%s1221_s26 + $0x68] sm:$0xff] %v461_v15  ;;  %v442_v23 = vmul.f32 %v1232_v37, %v1177_v6  ;;  %v454_v24 = vmul.f32 %v1217_v32, %v1175_v5  ;;  %v464_v25 = vsub.f32 %v440_v17, %v452_v19  ;;  %498 = sbr.rel (!%p1391_p5) target bundleno = 186 (0xba), region = 56 }
  0x9b   : > { %486 = vst [vmem:[%s1221_s26 + $0x78] sm:$0xff] %v462_v18  ;;  %v465_v27 = vsub.f32 %v441_v20, %v453_v21  ;;  %487 = vst [vmem:[%s1221_s26 + $0x88] sm:$0xff] %v463_v22 }
  0x9c   : > { %v466_v26 = vsub.f32 %v442_v23, %v454_v24  ;;  %488 = vst [vmem:[%s1221_s26 + $0x98] sm:$0xff] %v464_v25 }
  0x9d   : > { %489 = vst [vmem:[%s1221_s26 + $0xa8] sm:$0xff] %v465_v27 }
  0x9e   : > { %490 = vst [vmem:[%s1221_s26 + $0xb8] sm:$0xff] %v466_v26 }
  0x9f   : > { %s1402_s11 = smov (!%p501_p8, %s500_s11), 6 }
  0xa0   : > { %s1316_s14 = sshll.u32 %s1402_s11, 9 }
  0xa1   : > { %s507_s6 = ssub.s32 3072, %s1316_s14 }
  0xa2   : > { %508 = vsyncadd %s492_s9, %s507_s6  ;;  %p656_p4 = scmp.ne.s32.totalorder %s1316_s14, 0  ;;  %s672_s27 = smul.u32 3072, %s983_s19 }
  0xa3   : > { %s515_s25 = sshll.u32 %s1221_s26, 4  ;;  %s934_s29 = smov [#allocation9]   ;;  %s1329_s25 = int_to_ptr.vmem [resolvable:$true] %s515_s25 }
  0xa4   : > { %s1327_s30 = scalar_lea.hbm %s1377_s4, %s672_s27  ;;  %s850_s12 = scalar_lea.vmem %s1329_s25, %s1316_s14 }
  0xa5   : > { %p851_p11 = scmp.ne.s32.totalorder %s1329_s25, %s850_s12  ;;  %s854_s10 = sshll.u32 %s934_s29, 4  ;;  %s855_s10 = int_to_ptr.vmem [resolvable:$false] %s854_s10 }
  0xa6   : > { %s856_s19 = scalar_lea.vmem %s855_s10, 6144  ;;  %p857_p0 = scmp.lt.s32.totalorder %s1329_s25, %s855_s10 }
  0xa7   : > { %p852_p2 = pnand %p851_p11, %p656_p4  ;;  %p858_p6 = scmp.lt.s32.totalorder %s856_s19, %s850_s12 }
  0xa9   : > { %p853_p10 = pneg %p852_p2  ;;  %p859_p1 = por %p858_p6, %p857_p0 }
  0xab   : > { %p860_p3 = pnand %p859_p1, %p853_p10 }
  0xad   : > { %863 = shalt.err (!%p860_p3)
}
  0xae   : > { %s864_s23 = scalar_lea.hbm %s1327_s30, %s1316_s14  ;;  %s868_s26 = scalar_lea.hbm %s1377_s4, 8192 }
  0xaf   : > { %p865_p7 = scmp.ne.s32.totalorder %s1327_s30, %s864_s23  ;;  %p869_p13 = scmp.lt.s32.totalorder %s1327_s30, %s1377_s4 }
  0xb0   : > { %p870_p5 = scmp.lt.s32.totalorder %s868_s26, %s864_s23 }
  0xb1   : > { %p866_p9 = pnand %p865_p7, %p656_p4 }
  0xb2   : > { %p871_p8 = por %p870_p5, %p869_p13 }
  0xb3   : > { %p867_p12 = pneg %p866_p9 }
  0xb5   : > { %p872_p11 = pnand %p871_p8, %p867_p12 }
  0xb7   : > { %875 = shalt.err (!%p872_p11)
}
  0xb8   : > { %s935_s6 = smov 256   ;;  %s936_s27 = smov 16  }
  0xb9   : > { %521 = dma.vmem_to_hbm [thread:$0]  (%p656_p4), %s1329_s25, %s1316_s14, %s1327_s30, %s492_s9, %s935_s6, %s935_s6, %s936_s27  }
  0xba PF: > { %p703_p2 = scmp.ge.s32.totalorder %s922_s18, 2  ;;  %s530_s13 = sand.u32 1, %s910_s15  }
  0xbb   : > { %p1392_p10 = scmp.ne.s32.totalorder %s1383_s28, 0  ;;  %s531_s22 = scalar_lea.sflag [#allocation4], %s530_s13 }
  0xbd   : > { %p696_p0 = pnand %p703_p2, %p1392_p10 }
  0xbf   : > { %p697_p6 = pneg %p696_p0 }
  0xc1   : > { %905 = dma.done.wait (%p697_p6), %s531_s22, 3072  }
  0xc2   : > { %907 = vsyncadd (%p697_p6), %s531_s22, 4294964224  ;;  %p16_p1 = scmp.ge.s32.totalorder %s987_s21, 5   ;;  %s1393_s15 = smov %s914_s16 }
  0xc3   : > { %s1394_s16 = smov %s918_s17  ;;  %s1395_s17 = smov %s999_s24 }
  0xc4   : > { %s1396_s18 = smov %s987_s21  ;;  %18 = sbr.rel (!%p16_p1) target bundleno = 5 (0x5), region = 99 }
  0xc9   :  { %536 = vsyncpa [#allocation3], 1 }
  0xca   :  { %538 = vsyncpa [#allocation3 + $0x1], 1 }
  0xcb   :  { %539 = vsyncpa [#allocation6], 1 }
  0xcc   :  { %540 = vsyncpa [#allocation4], 1 }
  0xcd   :  { %542 = vsyncpa [#allocation4 + $0x1], 1 }

</bundles_post_ra>
